<compile_context>
chip_gen: v5e
topology: v5e:2x2
jax: 0.10.0
libtpu: 0.0.40
codegen_flags: <defaults>
</compile_context>

<pallas_src>
import jax
import jax.numpy as jnp
import numpy as np
from jax.experimental import pallas as pl
from jax.experimental.pallas import tpu as pltpu

LANE = 128  # pad hidden feature dim to a multiple of this for lane-dense tiles


def _choose_graphs_per_block(batch, node, target_rows=128, min_steps=2):
    """Largest divisor G of batch with G*node <= target_rows, preferring >= min_steps grid
    steps (keeps both v7x TensorCores busy via the 'parallel' grid axis)."""
    divisors = [g for g in range(1, batch + 1) if batch % g == 0]
    fit = [g for g in divisors if g * node <= target_rows] or [1]
    pref = [g for g in fit if batch // g >= min_steps]
    return max(pref) if pref else max(fit)


# ------------------------------------------------------------------
# Fused kernel: n_layers x GraphConv(+relu) + Linear head, G graphs per grid step
# ------------------------------------------------------------------

def _make_fused_gcn_kernel(n_layers, g_blk, node, n_classes):
    def kernel(*refs):
        # refs = [a_bd, x, w0, b0, ..., w_{L-1}, b_{L-1}, wc, bc, out]
        a_ref, x_ref = refs[0], refs[1]
        wb_refs = refs[2:2 + 2 * n_layers]
        wc_ref = refs[2 + 2 * n_layers]          # (n_classes, node, Hp)  lane-dense last dim
        bc_ref = refs[3 + 2 * n_layers]          # (1, n_classes)
        o_ref = refs[4 + 2 * n_layers]           # (1, G, n_classes)

        a = a_ref[0]                             # (GN, GN) block-diagonal normalized adjacency
        h = x_ref[0]                             # (GN, in_feats) stacked node rows of G graphs

        for l in range(n_layers):
            w = wb_refs[2 * l][...]              # (d_in, Hp)
            b = wb_refs[2 * l + 1][...]          # (1, Hp)
            if h.shape[1] <= w.shape[1]:
                # in <= out: aggregate first so the GN^2 matmul runs at the narrow width
                h = jnp.dot(a, h, preferred_element_type=jnp.float32)
                h = jnp.dot(h, w, preferred_element_type=jnp.float32)
            else:
                h = jnp.dot(h, w, preferred_element_type=jnp.float32)
                h = jnp.dot(a, h, preferred_element_type=jnp.float32)
            h = jnp.maximum(h + b, 0.0)          # GraphConv bias + relu
            # TODO(synk): nn.Dropout between layers is identity in eval/inference mode.

        # Classification head on the flattened per-graph embedding:
        #   logits[g, c] = bc[c] + sum_{n,h} h[g, n, h] * Wc[c, n, h]
        # Lane-dense VPU multiply + reduce (no tiny MXU dots).
        hp = h.shape[1]
        h3 = h.reshape(g_blk, node, hp)          # split leading dim only (lane layout unchanged)
        wc = wc_ref[...]                         # (n_classes, node, Hp)
        cols = []
        for c in range(n_classes):
            prod = h3 * wc[c][None, :, :]        # (G, node, Hp)  VPU
            s = jnp.sum(prod, axis=2)            # (G, node)      lane reduce
            s = jnp.sum(s, axis=1, keepdims=True)  # (G, 1)
            cols.append(s)
        logits = jnp.concatenate(cols, axis=1) + bc_ref[...]   # (G, n_classes)
        o_ref[0] = logits

    return kernel


# ------------------------------------------------------------------
# Wrapper: one pallas_call, grid over blocks of G graphs
# ------------------------------------------------------------------

def model_v3_forward(params, a_blocks, feats):
    batch, node, _ = a_blocks.shape
    in_feats = feats.shape[-1]
    n_layers = len(params["gconv"])
    n_classes = params["cls_b"].shape[-1]

    g_blk = _choose_graphs_per_block(batch, node)
    num_blocks = batch // g_blk
    gn = g_blk * node

    # Pack G graphs per step: stack their node rows, and build the block-diagonal adjacency
    # (zero off-diagonal blocks; exact — graphs do not exchange messages, as in batched DGL).
    feats_b = feats.reshape(num_blocks, gn, in_feats)
    a4 = a_blocks.reshape(num_blocks, g_blk, node, node)
    eye = jnp.eye(g_blk, dtype=a_blocks.dtype)
    a_bd = (a4[:, :, None, :, :] * eye[None, :, :, None, None]) \
        .transpose(0, 1, 3, 2, 4).reshape(num_blocks, gn, gn)

    kernel = _make_fused_gcn_kernel(n_layers, g_blk, node, n_classes)

    def full_spec(arr):
        nd = arr.ndim
        # Grid-invariant block: constant index map -> loaded once, never re-fetched.
        return pl.BlockSpec(arr.shape, lambda b, nd=nd: (0,) * nd)

    in_specs = [
        pl.BlockSpec((1, gn, gn), lambda b: (b, 0, 0)),        # per-block block-diag adjacency
        pl.BlockSpec((1, gn, in_feats), lambda b: (b, 0, 0)),  # per-block stacked node features
    ]
    args = [a_bd, feats_b]
    for (w, bvec) in params["gconv"]:
        in_specs += [full_spec(w), full_spec(bvec)]
        args += [w, bvec]
    in_specs += [full_spec(params["cls_w3"]), full_spec(params["cls_b"])]
    args += [params["cls_w3"], params["cls_b"]]

    out_spec = pl.BlockSpec((1, g_blk, n_classes), lambda b: (b, 0, 0))

    # Advisory cost estimate for the single fused custom call.
    flops = 0
    d = in_feats
    for (w, _) in params["gconv"]:
        d_out = w.shape[1]
        if d <= d_out:
            flops += 2 * gn * gn * d + 2 * gn * d * d_out
        else:
            flops += 2 * gn * d * d_out + 2 * gn * gn * d_out
        d = d_out
    flops += 2 * gn * d * n_classes
    flops *= num_blocks
    bytes_accessed = (int(np.prod(a_bd.shape)) + int(np.prod(feats_b.shape))) * 4
    for (w, bvec) in params["gconv"]:
        bytes_accessed += (int(np.prod(w.shape)) + int(np.prod(bvec.shape))) * 4
    bytes_accessed += int(np.prod(params["cls_w3"].shape)) * 4
    bytes_accessed += int(np.prod(params["cls_b"].shape)) * 4
    bytes_accessed += batch * n_classes * 4

    out = pl.pallas_call(
        kernel,
        out_shape=jax.ShapeDtypeStruct((num_blocks, g_blk, n_classes), jnp.float32),
        grid=(num_blocks,),
        in_specs=in_specs,
        out_specs=out_spec,
        compiler_params=pltpu.CompilerParams(
            dimension_semantics=("parallel",)),   # shard graph blocks across TCs on v7x megacore
        cost_estimate=pl.CostEstimate(flops=int(flops), transcendentals=0,
                                      bytes_accessed=int(bytes_accessed)),
    )(*args)
    return out.reshape(batch, n_classes)


# ------------------------------------------------------------------
# Parameters (raw, then packed/padded for the kernel) + reference
# ------------------------------------------------------------------

def init_raw_params(key, in_feats, n_hidden, n_classes, n_layers, node_each_graph):
    keys = jax.random.split(key, 2 * n_layers + 2)
    dims = [in_feats] + [n_hidden] * n_layers
    gconv_raw = []
    for i in range(n_layers):
        w = jax.random.normal(keys[2 * i], (dims[i], dims[i + 1]), jnp.float32) * 0.1
        b = jax.random.normal(keys[2 * i + 1], (dims[i + 1],), jnp.float32) * 0.01
        gconv_raw.append((w, b))
    cls_w = jax.random.normal(keys[-2], (n_classes, node_each_graph * n_hidden),
                              jnp.float32) * 0.05
    cls_b = jax.random.normal(keys[-1], (n_classes,), jnp.float32) * 0.01
    return gconv_raw, cls_w, cls_b


def pack_params(gconv_raw, cls_w, cls_b, node_each_graph, n_hidden):
    """Zero-pad the hidden dim to a multiple of 128 lanes and store the classifier weight
    lane-dense as (n_classes, node, Hp). Padding is exact (zeros contribute nothing)."""
    hp = ((n_hidden + LANE - 1) // LANE) * LANE
    gconv = []
    for li, (w, b) in enumerate(gconv_raw):
        d_in, d_out = w.shape
        in_pad = d_in if li == 0 else hp
        wp = jnp.zeros((in_pad, hp), jnp.float32).at[:d_in, :d_out].set(w)
        bp = jnp.zeros((1, hp), jnp.float32).at[0, :d_out].set(b)
        gconv.append((wp, bp))
    n_classes = cls_w.shape[0]
    wc3 = cls_w.reshape(n_classes, node_each_graph, n_hidden)
    wc3p = jnp.zeros((n_classes, node_each_graph, hp), jnp.float32)
    wc3p = wc3p.at[:, :, :n_hidden].set(wc3)
    return {"gconv": gconv, "cls_w3": wc3p, "cls_b": cls_b.reshape(1, n_classes)}


def build_normalized_adjacency_blocks(batch_size, node_each_graph):
    """Deterministic ring graph + self loops per graph; DGL norm='both' with
    degree clamp(min=1). Stored per graph as [batch, node, node], A[dst, src]."""
    n = node_each_graph
    adj = np.zeros((n, n), dtype=np.float32)
    for i in range(n):
        j = (i + 1) % n
        adj[j, i] = 1.0
        adj[i, j] = 1.0
        adj[i, i] = 1.0  # self loop
    out_deg = np.clip(adj.sum(axis=0), 1.0, None)   # out-degree of src
    in_deg = np.clip(adj.sum(axis=1), 1.0, None)    # in-degree of dst
    a_norm = (in_deg ** -0.5)[:, None] * adj * (out_deg ** -0.5)[None, :]
    blocks = np.broadcast_to(a_norm, (batch_size, n, n)).copy()
    return jnp.asarray(blocks, dtype=jnp.float32)


def reference_forward(gconv_raw, cls_w, cls_b, a_blocks, feats):
    """Pure-JAX reference with the original (unpadded) parameters."""
    h = feats.astype(jnp.float32)                         # (batch, node, in_feats)
    for (w, b) in gconv_raw:
        hw = jnp.einsum('bnf,fo->bno', h, w)
        h = jnp.maximum(jnp.einsum('bij,bjf->bif', a_blocks, hw) + b, 0.0)
    hf = h.reshape(h.shape[0], -1)
    return hf @ cls_w.T + cls_b


# ------------------------------------------------------------------

if __name__ == "__main__":
    batch_size = 8
    node_each_graph = 16
    in_feats = 4
    n_hidden = 32
    n_classes = 3
    n_layers = 3

    key = jax.random.PRNGKey(0)
    k_feat, k_param = jax.random.split(key)

    feats = jax.random.normal(k_feat, (batch_size, node_each_graph, in_feats), jnp.float32)
    a_blocks = build_normalized_adjacency_blocks(batch_size, node_each_graph)
    gconv_raw, cls_w, cls_b = init_raw_params(
        k_param, in_feats, n_hidden, n_classes, n_layers, node_each_graph)
    params = pack_params(gconv_raw, cls_w, cls_b, node_each_graph, n_hidden)

    logits = jax.jit(model_v3_forward)(params, a_blocks, feats)
    jax.block_until_ready(logits)

    ref = reference_forward(gconv_raw, cls_w, cls_b, a_blocks, feats)
    assert logits.shape == (batch_size, n_classes)
    assert logits.dtype == jnp.float32
    assert jnp.allclose(logits, ref, atol=1e-3, rtol=1e-2), (logits, ref)
    print("KERNEL_OK")
</pallas_src>

<mosaic_0001>
module attributes {stable_mosaic.version = 11 : i64} {
  func.func @kernel(%arg0: i32, %arg1: memref<1x64x64xf32, #tpu.memory_space<vmem>>, %arg2: memref<1x64x4xf32, #tpu.memory_space<vmem>>, %arg3: memref<4x128xf32, #tpu.memory_space<vmem>>, %arg4: memref<1x128xf32, #tpu.memory_space<vmem>>, %arg5: memref<128x128xf32, #tpu.memory_space<vmem>>, %arg6: memref<1x128xf32, #tpu.memory_space<vmem>>, %arg7: memref<128x128xf32, #tpu.memory_space<vmem>>, %arg8: memref<1x128xf32, #tpu.memory_space<vmem>>, %arg9: memref<3x16x128xf32, #tpu.memory_space<vmem>>, %arg10: memref<1x3xf32, #tpu.memory_space<vmem>>, %arg11: memref<1x4x3xf32, #tpu.memory_space<vmem>>) attributes {dimension_semantics = [#tpu.dimension_semantics<parallel>], iteration_bounds = array<i64: 2>, scalar_prefetch = 0 : i64, scratch_operands = 0 : i64, tpu.core_type = #tpu.core_type<tc>, window_params = [{transform_indices = @transform_0, window_bounds = array<i64: 1, 64, 64>}, {transform_indices = @transform_1, window_bounds = array<i64: 1, 64, 4>}, {pipeline_mode = #tpu.pipeline_mode<synchronous>, transform_indices = @transform_2, window_bounds = array<i64: 4, 128>}, {pipeline_mode = #tpu.pipeline_mode<synchronous>, transform_indices = @transform_3, window_bounds = array<i64: 1, 128>}, {pipeline_mode = #tpu.pipeline_mode<synchronous>, transform_indices = @transform_4, window_bounds = array<i64: 128, 128>}, {pipeline_mode = #tpu.pipeline_mode<synchronous>, transform_indices = @transform_5, window_bounds = array<i64: 1, 128>}, {pipeline_mode = #tpu.pipeline_mode<synchronous>, transform_indices = @transform_6, window_bounds = array<i64: 128, 128>}, {pipeline_mode = #tpu.pipeline_mode<synchronous>, transform_indices = @transform_7, window_bounds = array<i64: 1, 128>}, {pipeline_mode = #tpu.pipeline_mode<synchronous>, transform_indices = @transform_8, window_bounds = array<i64: 3, 16, 128>}, {pipeline_mode = #tpu.pipeline_mode<synchronous>, transform_indices = @transform_9, window_bounds = array<i64: 1, 3>}, {transform_indices = @transform_10, window_bounds = array<i64: 1, 4, 3>}]} {
    %c0 = arith.constant 0 : index
    %c0_0 = arith.constant 0 : index
    %c0_1 = arith.constant 0 : index
    %0 = vector.load %arg1[%c0, %c0_0, %c0_1] : memref<1x64x64xf32, #tpu.memory_space<vmem>>, vector<1x64x64xf32>
    %1 = vector.shape_cast %0 : vector<1x64x64xf32> to vector<64x64xf32>
    %c0_2 = arith.constant 0 : index
    %c0_3 = arith.constant 0 : index
    %c0_4 = arith.constant 0 : index
    %2 = vector.load %arg2[%c0_2, %c0_3, %c0_4] : memref<1x64x4xf32, #tpu.memory_space<vmem>>, vector<1x64x4xf32>
    %3 = vector.shape_cast %2 : vector<1x64x4xf32> to vector<64x4xf32>
    %c0_5 = arith.constant 0 : index
    %c0_6 = arith.constant 0 : index
    %4 = vector.load %arg3[%c0_5, %c0_6] : memref<4x128xf32, #tpu.memory_space<vmem>>, vector<4x128xf32>
    %c0_7 = arith.constant 0 : index
    %c0_8 = arith.constant 0 : index
    %5 = vector.load %arg4[%c0_7, %c0_8] : memref<1x128xf32, #tpu.memory_space<vmem>>, vector<1x128xf32>
    %cst = arith.constant dense<0.000000e+00> : vector<64x4xf32>
    %6 = tpu.matmul %1, %3, %cst {dimension_numbers = #tpu.dot_dimension_numbers<[1], [0], [0], [1], [0, 0, 1, 1], [], []>} : vector<64x64xf32>, vector<64x4xf32>, vector<64x4xf32> -> vector<64x4xf32>
    %cst_9 = arith.constant dense<0.000000e+00> : vector<64x128xf32>
    %7 = tpu.matmul %6, %4, %cst_9 {dimension_numbers = #tpu.dot_dimension_numbers<[1], [0], [0], [1], [0, 0, 1, 1], [], []>} : vector<64x4xf32>, vector<4x128xf32>, vector<64x128xf32> -> vector<64x128xf32>
    %8 = vector.broadcast %5 : vector<1x128xf32> to vector<64x128xf32>
    %9 = arith.addf %7, %8 : vector<64x128xf32>
    %cst_10 = arith.constant 0.000000e+00 : f32
    %10 = vector.broadcast %cst_10 : f32 to vector<64x128xf32>
    %11 = arith.maximumf %9, %10 : vector<64x128xf32>
    %c0_11 = arith.constant 0 : index
    %c0_12 = arith.constant 0 : index
    %12 = vector.load %arg5[%c0_11, %c0_12] : memref<128x128xf32, #tpu.memory_space<vmem>>, vector<128x128xf32>
    %c0_13 = arith.constant 0 : index
    %c0_14 = arith.constant 0 : index
    %13 = vector.load %arg6[%c0_13, %c0_14] : memref<1x128xf32, #tpu.memory_space<vmem>>, vector<1x128xf32>
    %cst_15 = arith.constant dense<0.000000e+00> : vector<64x128xf32>
    %14 = tpu.matmul %1, %11, %cst_15 {dimension_numbers = #tpu.dot_dimension_numbers<[1], [0], [0], [1], [0, 0, 1, 1], [], []>} : vector<64x64xf32>, vector<64x128xf32>, vector<64x128xf32> -> vector<64x128xf32>
    %cst_16 = arith.constant dense<0.000000e+00> : vector<64x128xf32>
    %15 = tpu.matmul %14, %12, %cst_16 {dimension_numbers = #tpu.dot_dimension_numbers<[1], [0], [0], [1], [0, 0, 1, 1], [], []>} : vector<64x128xf32>, vector<128x128xf32>, vector<64x128xf32> -> vector<64x128xf32>
    %16 = vector.broadcast %13 : vector<1x128xf32> to vector<64x128xf32>
    %17 = arith.addf %15, %16 : vector<64x128xf32>
    %cst_17 = arith.constant 0.000000e+00 : f32
    %18 = vector.broadcast %cst_17 : f32 to vector<64x128xf32>
    %19 = arith.maximumf %17, %18 : vector<64x128xf32>
    %c0_18 = arith.constant 0 : index
    %c0_19 = arith.constant 0 : index
    %20 = vector.load %arg7[%c0_18, %c0_19] : memref<128x128xf32, #tpu.memory_space<vmem>>, vector<128x128xf32>
    %c0_20 = arith.constant 0 : index
    %c0_21 = arith.constant 0 : index
    %21 = vector.load %arg8[%c0_20, %c0_21] : memref<1x128xf32, #tpu.memory_space<vmem>>, vector<1x128xf32>
    %cst_22 = arith.constant dense<0.000000e+00> : vector<64x128xf32>
    %22 = tpu.matmul %1, %19, %cst_22 {dimension_numbers = #tpu.dot_dimension_numbers<[1], [0], [0], [1], [0, 0, 1, 1], [], []>} : vector<64x64xf32>, vector<64x128xf32>, vector<64x128xf32> -> vector<64x128xf32>
    %cst_23 = arith.constant dense<0.000000e+00> : vector<64x128xf32>
    %23 = tpu.matmul %22, %20, %cst_23 {dimension_numbers = #tpu.dot_dimension_numbers<[1], [0], [0], [1], [0, 0, 1, 1], [], []>} : vector<64x128xf32>, vector<128x128xf32>, vector<64x128xf32> -> vector<64x128xf32>
    %24 = vector.broadcast %21 : vector<1x128xf32> to vector<64x128xf32>
    %25 = arith.addf %23, %24 : vector<64x128xf32>
    %cst_24 = arith.constant 0.000000e+00 : f32
    %26 = vector.broadcast %cst_24 : f32 to vector<64x128xf32>
    %27 = arith.maximumf %25, %26 : vector<64x128xf32>
    %28 = vector.shape_cast %27 : vector<64x128xf32> to vector<4x16x128xf32>
    %c0_25 = arith.constant 0 : index
    %c0_26 = arith.constant 0 : index
    %c0_27 = arith.constant 0 : index
    %29 = vector.load %arg9[%c0_25, %c0_26, %c0_27] : memref<3x16x128xf32, #tpu.memory_space<vmem>>, vector<3x16x128xf32>
    %30 = vector.extract_strided_slice %29 {offsets = [0, 0, 0], sizes = [1, 16, 128], strides = [1, 1, 1]} : vector<3x16x128xf32> to vector<1x16x128xf32>
    %31 = vector.shape_cast %30 : vector<1x16x128xf32> to vector<16x128xf32>
    %32 = vector.shape_cast %31 : vector<16x128xf32> to vector<1x16x128xf32>
    %33 = vector.broadcast %32 : vector<1x16x128xf32> to vector<4x16x128xf32>
    %34 = arith.mulf %28, %33 : vector<4x16x128xf32>
    %cst_28 = arith.constant dense<0.000000e+00> : vector<4x16xf32>
    %35 = vector.multi_reduction <add>, %34, %cst_28 [2] : vector<4x16x128xf32> to vector<4x16xf32>
    %cst_29 = arith.constant dense<0.000000e+00> : vector<4xf32>
    %36 = vector.multi_reduction <add>, %35, %cst_29 [1] : vector<4x16xf32> to vector<4xf32>
    %37 = vector.shape_cast %36 : vector<4xf32> to vector<4x1xf32>
    %38 = vector.extract_strided_slice %29 {offsets = [1, 0, 0], sizes = [1, 16, 128], strides = [1, 1, 1]} : vector<3x16x128xf32> to vector<1x16x128xf32>
    %39 = vector.shape_cast %38 : vector<1x16x128xf32> to vector<16x128xf32>
    %40 = vector.shape_cast %39 : vector<16x128xf32> to vector<1x16x128xf32>
    %41 = vector.broadcast %40 : vector<1x16x128xf32> to vector<4x16x128xf32>
    %42 = arith.mulf %28, %41 : vector<4x16x128xf32>
    %cst_30 = arith.constant dense<0.000000e+00> : vector<4x16xf32>
    %43 = vector.multi_reduction <add>, %42, %cst_30 [2] : vector<4x16x128xf32> to vector<4x16xf32>
    %cst_31 = arith.constant dense<0.000000e+00> : vector<4xf32>
    %44 = vector.multi_reduction <add>, %43, %cst_31 [1] : vector<4x16xf32> to vector<4xf32>
    %45 = vector.shape_cast %44 : vector<4xf32> to vector<4x1xf32>
    %46 = vector.extract_strided_slice %29 {offsets = [2, 0, 0], sizes = [1, 16, 128], strides = [1, 1, 1]} : vector<3x16x128xf32> to vector<1x16x128xf32>
    %47 = vector.shape_cast %46 : vector<1x16x128xf32> to vector<16x128xf32>
    %48 = vector.shape_cast %47 : vector<16x128xf32> to vector<1x16x128xf32>
    %49 = vector.broadcast %48 : vector<1x16x128xf32> to vector<4x16x128xf32>
    %50 = arith.mulf %28, %49 : vector<4x16x128xf32>
    %cst_32 = arith.constant dense<0.000000e+00> : vector<4x16xf32>
    %51 = vector.multi_reduction <add>, %50, %cst_32 [2] : vector<4x16x128xf32> to vector<4x16xf32>
    %cst_33 = arith.constant dense<0.000000e+00> : vector<4xf32>
    %52 = vector.multi_reduction <add>, %51, %cst_33 [1] : vector<4x16xf32> to vector<4xf32>
    %53 = vector.shape_cast %52 : vector<4xf32> to vector<4x1xf32>
    %54 = tpu.concatenate %37, %45, %53 in 1 : vector<4x1xf32>, vector<4x1xf32>, vector<4x1xf32> -> vector<4x3xf32>
    %c0_34 = arith.constant 0 : index
    %c0_35 = arith.constant 0 : index
    %55 = vector.load %arg10[%c0_34, %c0_35] : memref<1x3xf32, #tpu.memory_space<vmem>>, vector<1x3xf32>
    %56 = vector.broadcast %55 : vector<1x3xf32> to vector<4x3xf32>
    %57 = arith.addf %54, %56 : vector<4x3xf32>
    %c0_36 = arith.constant 0 : index
    %c0_37 = arith.constant 0 : index
    %c0_38 = arith.constant 0 : index
    %58 = vector.load %arg11[%c0_36, %c0_37, %c0_38] : memref<1x4x3xf32, #tpu.memory_space<vmem>>, vector<1x4x3xf32>
    %59 = vector.shape_cast %58 : vector<1x4x3xf32> to vector<4x3xf32>
    %60 = vector.shape_cast %57 : vector<4x3xf32> to vector<1x4x3xf32>
    tpu.vector_store %arg11[%c0_36, %c0_37, %c0_38], %60 {strides = array<i32>} : memref<1x4x3xf32, #tpu.memory_space<vmem>>, vector<1x4x3xf32>,
    return
  }
  func.func @transform_0(%arg0: i32) -> (i32, i32, i32) {
    %c0_i32 = arith.constant 0 : i32
    %c0_i32_0 = arith.constant 0 : i32
    %c0_i32_1 = arith.constant 0 : i32
    return %arg0, %c0_i32, %c0_i32_0 : i32, i32, i32
  }
  func.func @transform_1(%arg0: i32) -> (i32, i32, i32) {
    %c0_i32 = arith.constant 0 : i32
    %c0_i32_0 = arith.constant 0 : i32
    %c0_i32_1 = arith.constant 0 : i32
    return %arg0, %c0_i32, %c0_i32_0 : i32, i32, i32
  }
  func.func @transform_2(%arg0: i32) -> (i32, i32) {
    %c0_i32 = arith.constant 0 : i32
    %c0_i32_0 = arith.constant 0 : i32
    %c0_i32_1 = arith.constant 0 : i32
    return %c0_i32, %c0_i32_0 : i32, i32
  }
  func.func @transform_3(%arg0: i32) -> (i32, i32) {
    %c0_i32 = arith.constant 0 : i32
    %c0_i32_0 = arith.constant 0 : i32
    %c0_i32_1 = arith.constant 0 : i32
    return %c0_i32, %c0_i32_0 : i32, i32
  }
  func.func @transform_4(%arg0: i32) -> (i32, i32) {
    %c0_i32 = arith.constant 0 : i32
    %c0_i32_0 = arith.constant 0 : i32
    %c0_i32_1 = arith.constant 0 : i32
    return %c0_i32, %c0_i32_0 : i32, i32
  }
  func.func @transform_5(%arg0: i32) -> (i32, i32) {
    %c0_i32 = arith.constant 0 : i32
    %c0_i32_0 = arith.constant 0 : i32
    %c0_i32_1 = arith.constant 0 : i32
    return %c0_i32, %c0_i32_0 : i32, i32
  }
  func.func @transform_6(%arg0: i32) -> (i32, i32) {
    %c0_i32 = arith.constant 0 : i32
    %c0_i32_0 = arith.constant 0 : i32
    %c0_i32_1 = arith.constant 0 : i32
    return %c0_i32, %c0_i32_0 : i32, i32
  }
  func.func @transform_7(%arg0: i32) -> (i32, i32) {
    %c0_i32 = arith.constant 0 : i32
    %c0_i32_0 = arith.constant 0 : i32
    %c0_i32_1 = arith.constant 0 : i32
    return %c0_i32, %c0_i32_0 : i32, i32
  }
  func.func @transform_8(%arg0: i32) -> (i32, i32, i32) {
    %c0_i32 = arith.constant 0 : i32
    %c0_i32_0 = arith.constant 0 : i32
    %c0_i32_1 = arith.constant 0 : i32
    %c0_i32_2 = arith.constant 0 : i32
    return %c0_i32, %c0_i32_0, %c0_i32_1 : i32, i32, i32
  }
  func.func @transform_9(%arg0: i32) -> (i32, i32) {
    %c0_i32 = arith.constant 0 : i32
    %c0_i32_0 = arith.constant 0 : i32
    %c0_i32_1 = arith.constant 0 : i32
    return %c0_i32, %c0_i32_0 : i32, i32
  }
  func.func @transform_10(%arg0: i32) -> (i32, i32, i32) {
    %c0_i32 = arith.constant 0 : i32
    %c0_i32_0 = arith.constant 0 : i32
    %c0_i32_1 = arith.constant 0 : i32
    return %arg0, %c0_i32, %c0_i32_0 : i32, i32, i32
  }
}

</mosaic_0001>

<bundles_post_ra>
// kernel: model_v3_forward.1
= control target key start
LH: loop header
LB: loop body
LE: loop exit
PB: predicated region body
PF: predicated region fallthrough
CT: control target
= control target key end

     0   :  { %s1137_s13 = smov 0   ;;  %s1432_s0 = inlined_call_operand.vmem [shape: f32[2,64,64], index: 0, kind: input, shape index: {}]   ;;  %s1433_s1 = inlined_call_operand.vmem [shape: f32[2,64,4], index: 1, kind: input, shape index: {}]   ;;  %s1434_s2 = inlined_call_operand.vmem [shape: f32[4,128], index: 2, kind: input, shape index: {}]   ;;  %s1435_s3 = inlined_call_operand.vmem [shape: f32[1,128], index: 3, kind: input, shape index: {}]   ;;  %s1436_s4 = inlined_call_operand.vmem [shape: f32[128,128], index: 4, kind: input, shape index: {}]   ;;  %s1437_s5 = inlined_call_operand.vmem [shape: f32[1,128], index: 5, kind: input, shape index: {}]   ;;  %s1438_s6 = inlined_call_operand.vmem [shape: f32[128,128], index: 6, kind: input, shape index: {}]   ;;  %s1439_s7 = inlined_call_operand.vmem [shape: f32[1,128], index: 7, kind: input, shape index: {}]   ;;  %s1440_s8 = inlined_call_operand.vmem [shape: f32[3,16,128], index: 8, kind: input, shape index: {}]   ;;  %s1441_s9 = inlined_call_operand.vmem [shape: f32[1,3], index: 9, kind: input, shape index: {}]   ;;  %s1442_s10 = inlined_call_operand.vmem [shape: f32[2,4,3], index: 10, kind: output, shape index: {}]  }
   0x1 LB: > { %s1006_s14 = sadd.s32 4294967295, %s1080_s13   ;;  %p1010_p0 = scmp.ge.s32.totalorder %s1080_s13, 1  ;;  %s1080_s13 = sphi %s1137_s13, %s20_s13  }
   0x2   : > { %p322_p1 = scmp.lt.s32.totalorder %s1080_s13, 3 }
   0x4   : > { %p323_p2 = pnand %p1010_p0, %p322_p1 }
   0x5   : > { %p364_p3 = scmp.lt.s32.totalorder (!%p323_p2), %s1006_s14, 1 }
   0x6   : > { %326 = sbr.rel (%p323_p2) target bundleno = 1240 (0x4d8), region = 60 }
   0xb   : > { %s1444_s14 = smov (!%p364_p3, %s1006_s14), 1  ;;  %vm396_vm0 = vcmask 523264   ;;  %v394_v16 = vld [vmem:[%s1434_s2] sm:$0xf]  ;;  %vm490_vm1 = vcmask 1043456   ;;  %vm465_vm2 = vcmask 31744  }
   0xc   : > { %s1051_s15 = sshll.u32 %s1444_s14, 6  ;;  %1061 = vmatpush.msk.msra.mxu3 %vm490_vm1, %v394_v16  ;;  %1024 = vmatpush.msk.msra.mxu1 %vm490_vm1, %v394_v16  ;;  %v1070_v31 = vld [vmem:[%s1435_s3] ss:$0 sm:$0xff]  ;;  %v558_v50 = vld [vmem:[%s1436_s4 + $0x78] sm:$0xff]  ;;  %v557_v51 = vld [vmem:[%s1436_s4 + $0x70] sm:$0xff]  ;;  %vm806_vm3 = vcmask 130112  }
   0xd   : > { %s373_s18 = scalar_lea.vmem %s1433_s1, %s1051_s15  ;;  %s368_s21 = scalar_lea.vmem %s1432_s0, %s1051_s15  ;;  %v556_v52 = vld [vmem:[%s1436_s4 + $0x68] sm:$0xff]  ;;  %v555_v53 = vld [vmem:[%s1436_s4 + $0x60] sm:$0xff]  ;;  %v554_v54 = vld [vmem:[%s1436_s4 + $0x58] sm:$0xff]  ;;  %vm817_vm4 = vcmask 1041409   ;;  %vm819_vm5 = vcmask 1042434   ;;  %vm821_vm6 = vcmask 1043459  }
   0xe   : > { %v393_v0 = vld [vmem:[%s373_s18 + $0x38] sm:$0xff]  ;;  %v392_v1 = vld [vmem:[%s373_s18 + $0x30] sm:$0xff]  ;;  %v391_v2 = vld [vmem:[%s373_s18 + $0x28] sm:$0xff]  ;;  %604 = vmatpush.msrb.mxu3 %v558_v50  ;;  %vm824_vm7 = vcmask 125952   ;;  %vm930_vm8 = vcmask 7168   ;;  %s1015_s16 = sshll.u32 %s1444_s14, 2 }
   0xf   : > { %1053 = vmatpush.msra.mxu2 %v393_v0  ;;  %429 = vmatpush.msra.mxu0 %v393_v0  ;;  %v390_v3 = vld [vmem:[%s373_s18 + $0x20] sm:$0xff]  ;;  %v389_v4 = vld [vmem:[%s373_s18 + $0x18] sm:$0xff]  ;;  %v388_v5 = vld [vmem:[%s373_s18 + $0x10] sm:$0xff]  ;;  %vm932_vm9 = vcmask 15360   ;;  %vm939_vm10 = vcmask 19456  }
  0x10   : > { %v387_v6 = vld [vmem:[%s373_s18 + $0x8] sm:$0xff]  ;;  %v386_v7 = vld [vmem:[%s373_s18] sm:$0xff]  ;;  %v1170_v12 = vld [vmem:[%s368_s21 + $0x30] sm:$0xff]  ;;  %605 = vmatpush.msrb.mxu3 %v557_v51 }
  0x11   : > { %1054 = vmatpush.msra.mxu2 %v392_v1  ;;  %430 = vmatpush.msra.mxu0 %v392_v1  ;;  %v1154_v8 = vld [vmem:[%s368_s21 + $0x20] sm:$0xff]  ;;  %v1162_v10 = vld [vmem:[%s368_s21 + $0x28] sm:$0xff]  ;;  %v1172_v13 = vld [vmem:[%s368_s21 + $0x10] sm:$0xff] }
  0x12   : > { %v1156_v9 = vld [vmem:[%s368_s21] sm:$0xff]  ;;  %v1164_v11 = vld [vmem:[%s368_s21 + $0x8] sm:$0xff]  ;;  %v1178_v14 = vld [vmem:[%s368_s21 + $0x38] sm:$0xff]  ;;  %606 = vmatpush.msrb.mxu3 %v556_v52 }
  0x13   : > { %1055 = vmatpush.msra.mxu2 %v391_v2  ;;  %431 = vmatpush.msra.mxu0 %v391_v2  ;;  %v1180_v15 = vld [vmem:[%s368_s21 + $0x18] sm:$0xff]  ;;  %v553_v55 = vld [vmem:[%s1436_s4 + $0x50] sm:$0xff]  ;;  %v552_v56 = vld [vmem:[%s1436_s4 + $0x48] sm:$0xff]  ;;  %s377_s21 = scalar_lea.vmem %s1442_s10, %s1015_s16 }
  0x14   : > { %607 = vmatpush.msrb.mxu3 %v555_v53  ;;  %v551_v57 = vld [vmem:[%s1436_s4 + $0x40] sm:$0xff]  ;;  %v550_v58 = vld [vmem:[%s1436_s4 + $0x38] sm:$0xff]  ;;  %v549_v59 = vld [vmem:[%s1436_s4 + $0x30] sm:$0xff] }
  0x15   : > { %1056 = vmatpush.msra.mxu2 %v390_v3  ;;  %432 = vmatpush.msra.mxu0 %v390_v3  ;;  %v548_v60 = vld [vmem:[%s1436_s4 + $0x28] sm:$0xff]  ;;  %v547_v61 = vld [vmem:[%s1436_s4 + $0x20] sm:$0xff]  ;;  %v546_v62 = vld [vmem:[%s1436_s4 + $0x18] sm:$0xff] }
  0x16   : > { %608 = vmatpush.msrb.mxu3 %v554_v54  ;;  %v545_v63 = vld [vmem:[%s1436_s4 + $0x10] sm:$0xff]  ;;  %v544_v0 = vld [vmem:[%s1436_s4 + $0x8] sm:$0xff]  ;;  %v543_v1 = vld [vmem:[%s1436_s4] sm:$0xff] }
  0x17   : > { %1057 = vmatpush.msra.mxu2 %v389_v4  ;;  %433 = vmatpush.msra.mxu0 %v389_v4  ;;  %v656_v50 = vld [vmem:[%s1438_s6 + $0x18] sm:$0xff]  ;;  %v654_v51 = vld [vmem:[%s1438_s6 + $0x8] sm:$0xff]  ;;  %v653_v52 = vld [vmem:[%s1438_s6] sm:$0xff] }
  0x18   : > { %609 = vmatpush.msrb.mxu3 %v553_v55 }
  0x19   : > { %1058 = vmatpush.msra.mxu2 %v388_v5  ;;  %434 = vmatpush.msra.mxu0 %v388_v5 }
  0x1a   : > { %610 = vmatpush.msrb.mxu3 %v552_v56 }
  0x1b   : > { %1059 = vmatpush.msra.mxu2 %v387_v6  ;;  %435 = vmatpush.msra.mxu0 %v387_v6 }
  0x1c   : > { %611 = vmatpush.msrb.mxu3 %v551_v57 }
  0x1d   : > { %1060 = vmatpush.msra.mxu2 %v386_v7  ;;  %436 = vmatpush.msra.mxu0 %v386_v7 }
  0x1e   : > { %1020 = vmatmul.msk.f32.vlgmr.msra.gmra.mxu2 %vm396_vm0, %v1154_v8  ;;  %1016 = vmatmul.msk.f32.vlgmr.msra.gmra.mxu0 %vm396_vm0, %v1156_v9 }
  0x1f   : > { %612 = vmatpush.msrb.mxu3 %v550_v58 }
  0x21   : > { %613 = vmatpush.msrb.mxu3 %v549_v59  ;;  %v1334_v59 = vld [vmem:[%s1439_s7] ss:$0 sm:$0xff] }
  0x23   : > { %614 = vmatpush.msrb.mxu3 %v548_v60 }
  0x25   : > { %615 = vmatpush.msrb.mxu3 %v547_v61 }
  0x26   : > { %1021 = vmatmul.msk.f32.gmra.mxu2 %vm396_vm0, %v1162_v10  ;;  %1017 = vmatmul.msk.f32.gmra.mxu0 %vm396_vm0, %v1164_v11 }
  0x27   : > { %616 = vmatpush.msrb.mxu3 %v546_v62  ;;  %v763_v62 = vld [vmem:[%s1440_s8] sm:$0xff] }
  0x29   : > { %617 = vmatpush.msrb.mxu3 %v545_v63  ;;  %v765_v63 = vld [vmem:[%s1440_s8 + $0x10] sm:$0xff] }
  0x2b   : > { %618 = vmatpush.msrb.mxu3 %v544_v0 }
  0x2d   : > { %619 = vmatpush.msrb.mxu3 %v543_v1 }
  0x2e   : > { %1022 = vmatmul.msk.f32.gmra.mxu2 %vm396_vm0, %v1170_v12  ;;  %1018 = vmatmul.msk.f32.gmra.mxu0 %vm396_vm0, %v1172_v13 }
  0x36   : > { %1023 = vmatmul.msk.f32.gmra.mxu2 %vm396_vm0, %v1178_v14  ;;  %1019 = vmatmul.msk.f32.gmra.mxu0 %vm396_vm0, %v1180_v15 }
  0x9b   : > { %v438_v17 = vpop.f32.mrf.mxu0 }
  0x9c   : > { %1025 = vmatmul.msk.f32.vlgmr.msra.gmra.mxu1 %vm465_vm2, %v438_v17 }
  0xa1   : > { %v450_v18 = vpop.f32.mrf.mxu2 }
  0xa2   : > { %1029 = vmatmul.msk.f32.vlgmr.msra.gmra.mxu3 %vm465_vm2, %v450_v18 }
  0xa3   : > { %v441_v19 = vpop.f32.mrf.mxu0 }
  0xa4   : > { %1026 = vmatmul.msk.f32.gmra.mxu1 %vm465_vm2, %v441_v19 }
  0xa9   : > { %v453_v20 = vpop.f32.mrf.mxu2 }
  0xaa   : > { %1030 = vmatmul.msk.f32.gmra.mxu3 %vm465_vm2, %v453_v20 }
  0xab   : > { %v444_v21 = vpop.f32.mrf.mxu0 }
  0xac   : > { %1027 = vmatmul.msk.f32.gmra.mxu1 %vm465_vm2, %v444_v21 }
  0xb1   : > { %v456_v22 = vpop.f32.mrf.mxu2 }
  0xb2   : > { %1031 = vmatmul.msk.f32.gmra.mxu3 %vm465_vm2, %v456_v22 }
  0xb3   : > { %v447_v23 = vpop.f32.mrf.mxu0 }
  0xb4   : > { %1028 = vmatmul.msk.f32.gmra.mxu1 %vm465_vm2, %v447_v23 }
  0xb9   : > { %v459_v24 = vpop.f32.mrf.mxu2 }
  0xba   : > { %1032 = vmatmul.msk.f32.gmra.mxu3 %vm465_vm2, %v459_v24 }
 0x119   : > { %v511_v25 = vpop.f32.mrf.mxu1 }
 0x11a   : > { %v512_v46 = vadd.f32 %v1070_v31, %v511_v25  ;;  %v1071_v25 = vld [vmem:[%s1437_s5] ss:$0 sm:$0xff] }
 0x11c   : > { %v535_v49 = vmax.f32 %v512_v46, 0.0  ;;  %v661_v46 = vld [vmem:[%s1438_s6 + $0x40] sm:$0xff] }
 0x121   : > { %v514_v27 = vpop.f32.mrf.mxu1 }
 0x122   : > { %v515_v45 = vadd.f32 %v1070_v31, %v514_v27 }
 0x124   : > { %v536_v48 = vmax.f32 %v515_v45, 0.0  ;;  %v662_v45 = vld [vmem:[%s1438_s6 + $0x48] sm:$0xff] }
 0x125   : > { %v523_v26 = vpop.f32.mrf.mxu3 }
 0x126   : > { %v524_v38 = vadd.f32 %v1070_v31, %v523_v26 }
 0x128   : > { %v539_v42 = vmax.f32 %v524_v38, 0.0 }
 0x129   : > { %v517_v30 = vpop.f32.mrf.mxu1 }
 0x12a   : > { %v518_v43 = vadd.f32 %v1070_v31, %v517_v30 }
 0x12c   : > { %v537_v47 = vmax.f32 %v518_v43, 0.0  ;;  %v668_v43 = vld [vmem:[%s1438_s6 + $0x78] sm:$0xff] }
 0x12d   : > { %v526_v28 = vpop.f32.mrf.mxu3  ;;  %714 = vmatpush.msrb.mxu0 %v668_v43 }
 0x12e   : > { %v527_v36 = vadd.f32 %v1070_v31, %v526_v28 }
 0x130   : > { %v540_v41 = vmax.f32 %v527_v36, 0.0 }
 0x131   : > { %v520_v35 = vpop.f32.mrf.mxu1 }
 0x132   : > { %v521_v40 = vadd.f32 %v1070_v31, %v520_v35 }
 0x134   : > { %v538_v44 = vmax.f32 %v521_v40, 0.0 }
 0x135   : > { %v529_v29 = vpop.f32.mrf.mxu3 }
 0x136   : > { %v530_v33 = vadd.f32 %v1070_v31, %v529_v29 }
 0x138   : > { %v541_v39 = vmax.f32 %v530_v33, 0.0 }
 0x13d   : > { %v532_v32 = vpop.f32.mrf.mxu3 }
 0x13e   : > { %v533_v34 = vadd.f32 %v1070_v31, %v532_v32 }
 0x140   : > { %v542_v37 = vmax.f32 %v533_v34, 0.0 }
 0x142   : > { %568 = vmatpush.msrb.mxu2 %v542_v37 }
 0x144   : > { %569 = vmatpush.msrb.mxu2 %v541_v39 }
 0x146   : > { %570 = vmatpush.msrb.mxu2 %v540_v41 }
 0x148   : > { %571 = vmatpush.msrb.mxu2 %v539_v42 }
 0x14a   : > { %572 = vmatpush.msrb.mxu2 %v538_v44  ;;  %v667_v44 = vld [vmem:[%s1438_s6 + $0x70] sm:$0xff] }
 0x14b   : > { %715 = vmatpush.msrb.mxu0 %v667_v44 }
 0x14c   : > { %573 = vmatpush.msrb.mxu2 %v537_v47  ;;  %v660_v47 = vld [vmem:[%s1438_s6 + $0x38] sm:$0xff] }
 0x14e   : > { %574 = vmatpush.msrb.mxu2 %v536_v48  ;;  %v658_v48 = vld [vmem:[%s1438_s6 + $0x28] sm:$0xff] }
 0x150   : > { %575 = vmatpush.msrb.mxu2 %v535_v49  ;;  %v657_v49 = vld [vmem:[%s1438_s6 + $0x20] sm:$0xff] }
 0x151   : > { %1033 = vmatmul.msk.f32.vlgmr.msrb.gmra.mxu2 %vm396_vm0, %v1156_v9 }
 0x159   : > { %1034 = vmatmul.msk.f32.gmra.mxu2 %vm396_vm0, %v1164_v11 }
 0x161   : > { %1035 = vmatmul.msk.f32.gmra.mxu2 %vm396_vm0, %v1172_v13 }
 0x169   : > { %1036 = vmatmul.msk.f32.gmra.mxu2 %vm396_vm0, %v1180_v15 }
 0x171   : > { %1037 = vmatmul.msk.f32.gmra.mxu2 %vm396_vm0, %v1154_v8 }
 0x179   : > { %1038 = vmatmul.msk.f32.gmra.mxu2 %vm396_vm0, %v1162_v10 }
 0x181   : > { %1039 = vmatmul.msk.f32.gmra.mxu2 %vm396_vm0, %v1170_v12 }
 0x189   : > { %1040 = vmatmul.msk.f32.gmra.mxu2 %vm396_vm0, %v1178_v14 }
 0x1d4   : > { %v577_v2 = vpop.f32.mrf.mxu2 }
 0x1d5   : > { %620 = vmatmul.f32.vlgmr.msrb.gmra.mxu3 %v577_v2 }
 0x1dc   : > { %v580_v3 = vpop.f32.mrf.mxu2 }
 0x1dd   : > { %623 = vmatmul.f32.gmra.mxu3 %v580_v3 }
 0x1e4   : > { %v583_v4 = vpop.f32.mrf.mxu2 }
 0x1e5   : > { %626 = vmatmul.f32.gmra.mxu3 %v583_v4 }
 0x1ec   : > { %v586_v5 = vpop.f32.mrf.mxu2 }
 0x1ed   : > { %629 = vmatmul.f32.gmra.mxu3 %v586_v5  ;;  %v1347_v5 = vld [vmem:[%s1440_s8 + $0x20] sm:$0xff] }
 0x1f4   : > { %v589_v6 = vpop.f32.mrf.mxu2 }
 0x1f5   : > { %632 = vmatmul.f32.gmra.mxu3 %v589_v6  ;;  %v1352_v6 = vld [vmem:[%s1440_s8 + $0x28] sm:$0xff] }
 0x1fc   : > { %v592_v7 = vpop.f32.mrf.mxu2 }
 0x1fd   : > { %635 = vmatmul.f32.gmra.mxu3 %v592_v7  ;;  %v766_v7 = vld [vmem:[%s1440_s8 + $0x18] sm:$0xff] }
 0x204   : > { %v595_v16 = vpop.f32.mrf.mxu2 }
 0x205   : > { %638 = vmatmul.f32.gmra.mxu3 %v595_v16 }
 0x20c   : > { %v598_v17 = vpop.f32.mrf.mxu2 }
 0x20d   : > { %641 = vmatmul.f32.gmra.mxu3 %v598_v17 }
 0x258   : > { %v621_v18 = vpop.f32.mrf.mxu3 }
 0x259   : > { %v622_v39 = vadd.f32 %v1071_v25, %v621_v18 }
 0x25b   : > { %v645_v42 = vmax.f32 %v622_v39, 0.0 }
 0x260   : > { %v624_v19 = vpop.f32.mrf.mxu3 }
 0x261   : > { %v625_v37 = vadd.f32 %v1071_v25, %v624_v19 }
 0x263   : > { %v646_v41 = vmax.f32 %v625_v37, 0.0 }
 0x268   : > { %v627_v20 = vpop.f32.mrf.mxu3 }
 0x269   : > { %v628_v35 = vadd.f32 %v1071_v25, %v627_v20 }
 0x26b   : > { %v647_v40 = vmax.f32 %v628_v35, 0.0 }
 0x270   : > { %v630_v21 = vpop.f32.mrf.mxu3 }
 0x271   : > { %v631_v33 = vadd.f32 %v1071_v25, %v630_v21 }
 0x273   : > { %v648_v38 = vmax.f32 %v631_v33, 0.0 }
 0x278   : > { %v633_v22 = vpop.f32.mrf.mxu3 }
 0x279   : > { %v634_v31 = vadd.f32 %v1071_v25, %v633_v22  ;;  %v764_v22 = vld [vmem:[%s1440_s8 + $0x8] sm:$0xff] }
 0x27b   : > { %v649_v36 = vmax.f32 %v634_v31, 0.0 }
 0x280   : > { %v636_v23 = vpop.f32.mrf.mxu3 }
 0x281   : > { %v637_v29 = vadd.f32 %v1071_v25, %v636_v23 }
 0x283   : > { %v650_v34 = vmax.f32 %v637_v29, 0.0 }
 0x288   : > { %v639_v24 = vpop.f32.mrf.mxu3 }
 0x289   : > { %v640_v27 = vadd.f32 %v1071_v25, %v639_v24 }
 0x28b   : > { %v651_v32 = vmax.f32 %v640_v27, 0.0 }
 0x290   : > { %v642_v26 = vpop.f32.mrf.mxu3 }
 0x291   : > { %v643_v28 = vadd.f32 %v1071_v25, %v642_v26 }
 0x293   : > { %v652_v30 = vmax.f32 %v643_v28, 0.0 }
 0x295   : > { %678 = vmatpush.msrb.mxu1 %v652_v30 }
 0x297   : > { %679 = vmatpush.msrb.mxu1 %v651_v32 }
 0x299   : > { %680 = vmatpush.msrb.mxu1 %v650_v34 }
 0x29b   : > { %681 = vmatpush.msrb.mxu1 %v649_v36 }
 0x29d   : > { %682 = vmatpush.msrb.mxu1 %v648_v38 }
 0x29f   : > { %683 = vmatpush.msrb.mxu1 %v647_v40 }
 0x2a1   : > { %684 = vmatpush.msrb.mxu1 %v646_v41 }
 0x2a3   : > { %685 = vmatpush.msrb.mxu1 %v645_v42 }
 0x2a4   : > { %1041 = vmatmul.msk.f32.vlgmr.msrb.gmra.mxu1 %vm396_vm0, %v1156_v9  ;;  %v666_v9 = vld [vmem:[%s1438_s6 + $0x68] sm:$0xff] }
 0x2a5   : > { %716 = vmatpush.msrb.mxu0 %v666_v9 }
 0x2ac   : > { %1042 = vmatmul.msk.f32.gmra.mxu1 %vm396_vm0, %v1164_v11  ;;  %v665_v11 = vld [vmem:[%s1438_s6 + $0x60] sm:$0xff] }
 0x2ad   : > { %717 = vmatpush.msrb.mxu0 %v665_v11 }
 0x2b4   : > { %1043 = vmatmul.msk.f32.gmra.mxu1 %vm396_vm0, %v1172_v13  ;;  %v664_v13 = vld [vmem:[%s1438_s6 + $0x58] sm:$0xff] }
 0x2b5   : > { %718 = vmatpush.msrb.mxu0 %v664_v13 }
 0x2bc   : > { %1044 = vmatmul.msk.f32.gmra.mxu1 %vm396_vm0, %v1180_v15  ;;  %v663_v15 = vld [vmem:[%s1438_s6 + $0x50] sm:$0xff] }
 0x2bd   : > { %719 = vmatpush.msrb.mxu0 %v663_v15 }
 0x2bf   : > { %720 = vmatpush.msrb.mxu0 %v662_v45 }
 0x2c1   : > { %721 = vmatpush.msrb.mxu0 %v661_v46 }
 0x2c3   : > { %722 = vmatpush.msrb.mxu0 %v660_v47 }
 0x2c4   : > { %1045 = vmatmul.msk.f32.gmra.mxu1 %vm396_vm0, %v1154_v8  ;;  %v659_v8 = vld [vmem:[%s1438_s6 + $0x30] sm:$0xff] }
 0x2c5   : > { %723 = vmatpush.msrb.mxu0 %v659_v8 }
 0x2c7   : > { %724 = vmatpush.msrb.mxu0 %v658_v48 }
 0x2c9   : > { %725 = vmatpush.msrb.mxu0 %v657_v49 }
 0x2cb   : > { %726 = vmatpush.msrb.mxu0 %v656_v50 }
 0x2cc   : > { %1046 = vmatmul.msk.f32.gmra.mxu1 %vm396_vm0, %v1162_v10  ;;  %v655_v10 = vld [vmem:[%s1438_s6 + $0x10] sm:$0xff] }
 0x2cd   : > { %727 = vmatpush.msrb.mxu0 %v655_v10 }
 0x2cf   : > { %728 = vmatpush.msrb.mxu0 %v654_v51 }
 0x2d1   : > { %729 = vmatpush.msrb.mxu0 %v653_v52 }
 0x2d4   : > { %1047 = vmatmul.msk.f32.gmra.mxu1 %vm396_vm0, %v1170_v12 }
 0x2dc   : > { %1048 = vmatmul.msk.f32.gmra.mxu1 %vm396_vm0, %v1178_v14 }
 0x321   : > { %v687_v12 = vpop.f32.mrf.mxu1 }
 0x322   : > { %730 = vmatmul.f32.vlgmr.msrb.gmra.mxu0 %v687_v12 }
 0x329   : > { %v690_v53 = vpop.f32.mrf.mxu1 }
 0x32a   : > { %733 = vmatmul.f32.gmra.mxu0 %v690_v53 }
 0x331   : > { %v693_v54 = vpop.f32.mrf.mxu1 }
 0x332   : > { %736 = vmatmul.f32.gmra.mxu0 %v693_v54 }
 0x339   : > { %v696_v55 = vpop.f32.mrf.mxu1 }
 0x33a   : > { %739 = vmatmul.f32.gmra.mxu0 %v696_v55 }
 0x341   : > { %v699_v56 = vpop.f32.mrf.mxu1 }
 0x342   : > { %742 = vmatmul.f32.gmra.mxu0 %v699_v56 }
 0x349   : > { %v702_v57 = vpop.f32.mrf.mxu1 }
 0x34a   : > { %745 = vmatmul.f32.gmra.mxu0 %v702_v57 }
 0x351   : > { %v705_v58 = vpop.f32.mrf.mxu1 }
 0x352   : > { %748 = vmatmul.f32.gmra.mxu0 %v705_v58 }
 0x359   : > { %v708_v14 = vpop.f32.mrf.mxu1 }
 0x35a   : > { %751 = vmatmul.f32.gmra.mxu0 %v708_v14 }
 0x39f   : > { %v731_v60 = vpop.f32.mrf.mxu0 }
 0x3a0   : > { %v732_v61 = vadd.f32 %v1334_v59, %v731_v60 }
 0x3a2   : > { %v755_v0 = vmax.f32 %v732_v61, 0.0 }
 0x3a4   : > { %v769_v1 = vmul.f32 %v763_v62, %v755_v0  ;;  %v828_v2 = vmul.f32 %v765_v63, %v755_v0  ;;  %v879_v17 = vmul.f32 %v1347_v5, %v755_v0 }
 0x3a6   : > { %777 = vadd.xlane.f32.xlu0 %v769_v1  ;;  %836 = vadd.xlane.f32.xlu2 %v828_v2  ;;  %v801_v1 = vlaneseq }
 0x3a7   : > { %v734_v3 = vpop.f32.mrf.mxu0 }
 0x3a8   : > { %v735_v4 = vadd.f32 %v1334_v59, %v734_v3  ;;  %v1380_v3 = vand.u32 127, %v801_v1 }
 0x3aa   : > { %v756_v16 = vmax.f32 %v735_v4, 0.0  ;;  %v804_v4 = vadd.s32 4294967288, %v1380_v3 }
 0x3ac   : > { %v880_v18 = vmul.f32 %v1352_v6, %v756_v16  ;;  %v829_v19 = vmul.f32 %v766_v7, %v756_v16  ;;  %v770_v24 = vmul.f32 %v764_v22, %v756_v16 }
 0x3ae   : > { %887 = vadd.xlane.f32.xlu0 %v879_v17  ;;  %889 = vadd.xlane.f32.xlu1 %v880_v18 }
 0x3af   : > { %v737_v20 = vpop.f32.mrf.mxu0  ;;  %838 = vadd.xlane.f32.xlu2 %v829_v19 }
 0x3b0   : > { %v738_v21 = vadd.f32 %v1334_v59, %v737_v20 }
 0x3b2   : > { %v757_v23 = vmax.f32 %v738_v21, 0.0 }
 0x3b4   : > { %v771_v25 = vmul.f32 %v763_v62, %v757_v23  ;;  %v881_v26 = vmul.f32 %v1347_v5, %v757_v23  ;;  %v830_v30 = vmul.f32 %v765_v63, %v757_v23 }
 0x3b6   : > { %779 = vadd.xlane.f32.xlu0 %v770_v24  ;;  %781 = vadd.xlane.f32.xlu1 %v771_v25 }
 0x3b7   : > { %v740_v27 = vpop.f32.mrf.mxu0  ;;  %891 = vadd.xlane.f32.xlu2 %v881_v26 }
 0x3b8   : > { %v741_v28 = vadd.f32 %v1334_v59, %v740_v27 }
 0x3ba   : > { %v758_v29 = vmax.f32 %v741_v28, 0.0 }
 0x3bc   : > { %v772_v31 = vmul.f32 %v764_v22, %v758_v29  ;;  %v882_v35 = vmul.f32 %v1352_v6, %v758_v29  ;;  %v831_v36 = vmul.f32 %v766_v7, %v758_v29 }
 0x3be   : > { %840 = vadd.xlane.f32.xlu0 %v830_v30  ;;  %783 = vadd.xlane.f32.xlu1 %v772_v31 }
 0x3bf   : > { %v743_v32 = vpop.f32.mrf.mxu0 }
 0x3c0   : > { %v744_v33 = vadd.f32 %v1334_v59, %v743_v32 }
 0x3c2   : > { %v759_v34 = vmax.f32 %v744_v33, 0.0 }
 0x3c4   : > { %v773_v37 = vmul.f32 %v763_v62, %v759_v34  ;;  %v832_v41 = vmul.f32 %v765_v63, %v759_v34  ;;  %v883_v43 = vmul.f32 %v1347_v5, %v759_v34 }
 0x3c6   : > { %893 = vadd.xlane.f32.xlu0 %v882_v35  ;;  %842 = vadd.xlane.f32.xlu1 %v831_v36 }
 0x3c7   : > { %785 = vadd.xlane.f32.xlu2 %v773_v37  ;;  %v746_v38 = vpop.f32.mrf.mxu0 }
 0x3c8   : > { %v747_v39 = vadd.f32 %v1334_v59, %v746_v38 }
 0x3ca   : > { %v760_v40 = vmax.f32 %v747_v39, 0.0 }
 0x3cc   : > { %v774_v42 = vmul.f32 %v764_v22, %v760_v40  ;;  %v833_v45 = vmul.f32 %v766_v7, %v760_v40  ;;  %v884_v48 = vmul.f32 %v1352_v6, %v760_v40 }
 0x3ce   : > { %844 = vadd.xlane.f32.xlu1 %v832_v41  ;;  %787 = vadd.xlane.f32.xlu0 %v774_v42 }
 0x3cf   : > { %895 = vadd.xlane.f32.xlu2 %v883_v43  ;;  %v749_v44 = vpop.f32.mrf.mxu0 }
 0x3d0   : > { %v750_v9 = vadd.f32 %v1334_v59, %v749_v44 }
 0x3d2   : > { %v761_v11 = vmax.f32 %v750_v9, 0.0 }
 0x3d4   : > { %v834_v13 = vmul.f32 %v765_v63, %v761_v11  ;;  %v775_v15 = vmul.f32 %v763_v62, %v761_v11  ;;  %v885_v10 = vmul.f32 %v1347_v5, %v761_v11 }
 0x3d6   : > { %848 = vadd.xlane.f32.xlu0 %v834_v13  ;;  %789 = vadd.xlane.f32.xlu1 %v775_v15 }
 0x3d7   : > { %846 = vadd.xlane.f32.xlu2 %v833_v45  ;;  %v752_v46 = vpop.f32.mrf.mxu0 }
 0x3d8   : > { %v753_v47 = vadd.f32 %v1334_v59, %v752_v46 }
 0x3da   : > { %v762_v8 = vmax.f32 %v753_v47, 0.0 }
 0x3dc   : > { %v835_v49 = vmul.f32 %v766_v7, %v762_v8  ;;  %v776_v50 = vmul.f32 %v764_v22, %v762_v8  ;;  %v886_v51 = vmul.f32 %v1352_v6, %v762_v8 }
 0x3de   : > { %897 = vadd.xlane.f32.xlu0 %v884_v48  ;;  %850 = vadd.xlane.f32.xlu1 %v835_v49 }
 0x3df   : > { %791 = vadd.xlane.f32.xlu2 %v776_v50 }
 0x3e6   : > { %899 = vadd.xlane.f32.xlu1 %v885_v10 }
 0x3e7   : > { %901 = vadd.xlane.f32.xlu2 %v886_v51 }
 0x419   : > { %v778_v52 = vpop.xlane.xlu0 %777  ;;  %v837_v12 = vpop.xlane.xlu2 %836 }
 0x41a   : > { %v860_v21 = vperm.slane %v837_v12, %v1380_v3  ;;  %v803_v24 = vperm.slane %v778_v52, %v1380_v3 }
 0x421   : > { %v1374_v53 = vpop.xlane.xlu0 %887  ;;  %v1376_v54 = vpop.xlane.xlu1 %889 }
 0x422   : > { %v839_v55 = vpop.xlane.xlu2 %838  ;;  %v911_v8 = vperm.slane %v1374_v53, %v1380_v3  ;;  %v912_v48 = vperm.slane %v1376_v54, %v804_v4 }
 0x423   : > { %v861_v16 = vperm.slane %v839_v55, %v804_v4 }
 0x424   : > { %v913_v54 = vsel %vm806_vm3, %v912_v48, %v911_v8 }
 0x425   : > { %v862_v27 = vsel %vm806_vm3, %v861_v16, %v860_v21 }
 0x429   : > { %v780_v56 = vpop.xlane.xlu0 %779  ;;  %v782_v57 = vpop.xlane.xlu1 %781 }
 0x42a   : > { %v1378_v59 = vpop.xlane.xlu2 %891  ;;  %v805_v18 = vperm.slane %v780_v56, %v804_v4  ;;  %v808_v25 = vperm.slane %v782_v57, %v1380_v3 }
 0x42b   : > { %v914_v49 = vperm.slane %v1378_v59, %v1380_v3 }
 0x42c   : > { %v807_v30 = vsel %vm806_vm3, %v805_v18, %v803_v24 }
 0x431   : > { %v841_v58 = vpop.xlane.xlu0 %840  ;;  %v784_v14 = vpop.xlane.xlu1 %783 }
 0x432   : > { %v809_v19 = vperm.slane %v784_v14, %v804_v4  ;;  %v863_v22 = vperm.slane %v841_v58, %v1380_v3 }
 0x434   : > { %v810_v31 = vsel %vm806_vm3, %v809_v19, %v808_v25 }
 0x435   : > { %v818_v44 = vsel %vm817_vm4, %v810_v31, %v807_v30 }
 0x439   : > { %v894_v60 = vpop.xlane.xlu0 %893  ;;  %v843_v61 = vpop.xlane.xlu1 %842 }
 0x43a   : > { %v786_v62 = vpop.xlane.xlu2 %785  ;;  %v864_v17 = vperm.slane %v843_v61, %v804_v4  ;;  %v915_v9 = vperm.slane %v894_v60, %v804_v4 }
 0x43b   : > { %v811_v29 = vperm.slane %v786_v62, %v1380_v3 }
 0x43c   : > { %v865_v28 = vsel %vm806_vm3, %v864_v17, %v863_v22  ;;  %v916_v51 = vsel %vm806_vm3, %v915_v9, %v914_v49 }
 0x43d   : > { %v872_v41 = vsel %vm817_vm4, %v865_v28, %v862_v27  ;;  %v923_v57 = vsel %vm817_vm4, %v916_v51, %v913_v54 }
 0x441   : > { %v845_v63 = vpop.xlane.xlu1 %844  ;;  %v788_v0 = vpop.xlane.xlu0 %787 }
 0x442   : > { %v896_v2 = vpop.xlane.xlu2 %895  ;;  %v812_v23 = vperm.slane %v788_v0, %v804_v4  ;;  %v866_v26 = vperm.slane %v845_v63, %v1380_v3  ;;  %v1073_v63 = vld [vmem:[%s1441_s9] ss:$0 sm:$0xff] }
 0x443   : > { %v917_v10 = vperm.slane %v896_v2, %v1380_v3 }
 0x444   : > { %v813_v34 = vsel %vm806_vm3, %v812_v23, %v811_v29 }
 0x445   : > { %v820_v15 = vsel %vm819_vm5, %v813_v34, %v818_v44 }
 0x449   : > { %v849_v5 = vpop.xlane.xlu0 %848  ;;  %v790_v6 = vpop.xlane.xlu1 %789 }
 0x44a   : > { %v847_v7 = vpop.xlane.xlu2 %846  ;;  %v869_v35 = vperm.slane %v849_v5, %v1380_v3  ;;  %v814_v38 = vperm.slane %v790_v6, %v1380_v3 }
 0x44b   : > { %v867_v20 = vperm.slane %v847_v7, %v804_v4 }
 0x44d   : > { %v868_v32 = vsel %vm806_vm3, %v867_v20, %v866_v26 }
 0x44e   : > { %v873_v43 = vsel %vm819_vm5, %v868_v32, %v872_v41 }
 0x451   : > { %v851_v33 = vpop.xlane.xlu1 %850  ;;  %v898_v39 = vpop.xlane.xlu0 %897 }
 0x452   : > { %v870_v36 = vperm.slane %v851_v33, %v804_v4  ;;  %v792_v37 = vpop.xlane.xlu2 %791  ;;  %v918_v45 = vperm.slane %v898_v39, %v804_v4 }
 0x453   : > { %v815_v40 = vperm.slane %v792_v37, %v804_v4 }
 0x454   : > { %v871_v42 = vsel %vm806_vm3, %v870_v36, %v869_v35  ;;  %v919_v12 = vsel %vm806_vm3, %v918_v45, %v917_v10 }
 0x455   : > { %v874_v11 = vsel %vm821_vm6, %v871_v42, %v873_v43  ;;  %v816_v13 = vsel %vm806_vm3, %v815_v40, %v814_v38  ;;  %v924_v14 = vsel %vm819_vm5, %v919_v12, %v923_v57 }
 0x456   : > { %v876_v46 = vsel %vm824_vm7, %v874_v11, 0.0  ;;  %v822_v47 = vsel %vm821_vm6, %v816_v13, %v820_v15 }
 0x457   : > { %877 = vadd.xlane.f32.xlu1 %v876_v46  ;;  %v825_v50 = vsel %vm824_vm7, %v822_v47, 0.0 }
 0x458   : > { %826 = vadd.xlane.f32.xlu0 %v825_v50 }
 0x459   : > { %v900_v52 = vpop.xlane.xlu1 %899 }
 0x45a   : > { %v920_v55 = vperm.slane %v900_v52, %v1380_v3  ;;  %v902_v53 = vpop.xlane.xlu2 %901 }
 0x45b   : > { %v921_v56 = vperm.slane %v902_v53, %v804_v4 }
 0x45d   : > { %v922_v58 = vsel %vm806_vm3, %v921_v56, %v920_v55 }
 0x45e   : > { %v925_v59 = vsel %vm821_vm6, %v922_v58, %v924_v14 }
 0x45f   : > { %v927_v60 = vsel %vm824_vm7, %v925_v59, 0.0 }
 0x460   : > { %928 = vadd.xlane.f32.xlu2 %v927_v60 }
 0x4ca   : > { %v878_v61 = vpop.xlane.xlu1 %877 }
 0x4cb   : > { %v827_v62 = vpop.xlane.xlu0 %826 }
 0x4cc   : > { %v931_v0 = vsel %vm930_vm8, %v827_v62, %v878_v61 }
 0x4d3   : > { %v929_v1 = vpop.xlane.xlu2 %928 }
 0x4d4   : > { %v933_v2 = vsel %vm932_vm9, %v931_v0, %v929_v1 }
 0x4d5   : > { %v938_v3 = vadd.f32 %v1073_v63, %v933_v2 }
 0x4d7   : > { %940 = vst.msk [vmem:[%s377_s21] sm:$0xf] %vm939_vm10, %v938_v3 }
 0x4d8 PF: > { %s20_s13 = sadd.s32 1, %s1080_s13  }
 0x4d9   : > { %p17_p4 = scmp.ge.s32.totalorder %s20_s13, 4  }
 0x4db   :  { %19 = sbr.rel (!%p17_p4) target bundleno = 1 (0x1), region = 93 }

</bundles_post_ra>
